<compile_context>
chip_gen: v7x
topology: tpu7x:2x2x1
jax: 0.10.0
libtpu: 0.0.40
codegen_flags: <defaults>
</compile_context>

<pallas_src>
import numpy as np
import jax
import jax.numpy as jnp
from jax.experimental import pallas as pl
from jax.experimental.pallas import tpu as pltpu


def up_conv_kernel(x0_ref, x1_ref, x2_ref, w0_ref, w1_ref, w2_ref, u_ref,
                   shift_ref, o_ref):
    # x*_ref:    (1, 1, Cin, Hin*Win)  padded low-res depth planes k, k+1, k+2 (bf16)
    # w*_ref:    (9*2*Cout, Cin)       depth-parity-folded, BN-scaled weights (bf16),
    #                                  rows (tap, parity, cout)-major
    # u_ref:     (9, Hin*Win, H*W)     exact 0/1 upsample + 3x3-spatial-tap gather (bf16)
    # shift_ref: (2*Cout, 1)           fused conv-bias + BN shift (f32)
    # o_ref:     (1, Cout, 2*H*W)      output planes 2k and 2k+1, NCDHW-native (f32)
    cout = o_ref.shape[1]
    cout2 = 2 * cout
    hw_out = u_ref.shape[2]

    x0 = x0_ref[0, 0]
    x1 = x1_ref[0, 0]
    x2 = x2_ref[0, 0]

    # Fold channels + the 3 depth taps for both output-plane parities (stacked in M).
    # bf16 operands, f32 accumulation.  No in-kernel concat of the depth planes:
    # three small accumulating matmuls keep every operand layout trivial.
    c = (jnp.dot(w0_ref[...], x0, preferred_element_type=jnp.float32)
         + jnp.dot(w1_ref[...], x1, preferred_element_type=jnp.float32)
         + jnp.dot(w2_ref[...], x2, preferred_element_type=jnp.float32))
    c = c.astype(jnp.bfloat16)  # single cast; dominant matmul runs bf16 x bf16

    # Upsample + 3x3 spatial taps + spatial zero padding: 9 accumulating matmuls
    # against the exact 0/1 tap matrices (no sublane->lane reshape relayout; each
    # LHS slice starts at a multiple of 2*Cout rows).
    y = jnp.zeros((cout2, hw_out), jnp.float32)
    for t in range(9):
        ct = c[t * cout2:(t + 1) * cout2, :]
        y = y + jnp.dot(ct, u_ref[t], preferred_element_type=jnp.float32)

    # Epilogue: BN scale is already folded into the weights; add shift + ReLU.
    y = jnp.maximum(y + shift_ref[...], 0.0)
    o_ref[0, :, 0:hw_out] = y[:cout, :]            # output plane 2k
    o_ref[0, :, hw_out:2 * hw_out] = y[cout:, :]   # output plane 2k+1


def _build_upsample_tap_matrix(h_in, w_in, sf=2, k=3):
    """U[t*Hin*Win + il, h*W + w] = 1 iff spatial tap t=(kh,kw) of output pixel (h,w)
    reads (in-bounds) the x2-nearest-upsampled pixel that comes from low-res flat il."""
    h_out, w_out = h_in * sf, w_in * sf
    u = np.zeros((k * k * h_in * w_in, h_out * w_out), np.float32)
    hs = np.arange(h_out)
    ws = np.arange(w_out)
    for kh in range(k):
        for kw in range(k):
            t = kh * k + kw
            hu = hs + kh - 1
            wu = ws + kw - 1
            vh = (hu >= 0) & (hu < h_out)
            vw = (wu >= 0) & (wu < w_out)
            hh, ww = np.meshgrid(hs[vh], ws[vw], indexing="ij")
            hhu, wwu = np.meshgrid(hu[vh], wu[vw], indexing="ij")
            il = (hhu // sf) * w_in + (wwu // sf)
            o = hh * w_out + ww
            u[t * h_in * w_in + il.ravel(), o.ravel()] = 1.0
    return u


def up_conv_forward(x, weight, bias, gamma, beta, running_mean, running_var,
                    eps=1e-5, scale_factor=2):
    """x: (N, Cin, Din, Hin, Win) float32 (PyTorch NCDHW).
    Returns (N, Cout, 2*Din, 2*Hin, 2*Win) float32."""
    assert scale_factor == 2, "kernel is specialized to scale_factor=2"
    n, cin, d_in, h_in, w_in = x.shape
    cout = weight.shape[0]
    d_out, h_out, w_out = 2 * d_in, 2 * h_in, 2 * w_in
    hw_in, hw_out = h_in * w_in, h_out * w_out

    # Input prep: NCDHW -> (N, Din+2, Cin, Hin*Win), zero plane at both depth ends,
    # cast to bf16 in the wrapper (halves DMA bytes + VMEM per plane).
    x_t = jnp.transpose(x, (0, 2, 1, 3, 4)).reshape(n, d_in, cin, hw_in)
    x_dp = jnp.pad(x_t.astype(jnp.bfloat16), ((0, 0), (1, 1), (0, 0), (0, 0)))

    # BatchNorm3d (eval mode) folded into conv weights / shift.
    bn_scale = (gamma / jnp.sqrt(running_var + eps)).astype(jnp.float32)
    shift = ((bias - running_mean) * bn_scale + beta).astype(jnp.float32)
    shift2 = jnp.concatenate([shift, shift]).reshape(2 * cout, 1)

    w_s = weight.astype(jnp.float32) * bn_scale[:, None, None, None, None]

    def _taps(wd):  # (Cout, Cin, 3, 3) -> (9, Cout, Cin), tap index t = kh*3 + kw
        return jnp.transpose(wd, (2, 3, 0, 1)).reshape(9, cout, cin)

    def _stack(even_part, odd_part):  # -> (9*2*Cout, Cin), rows (tap, parity, cout)
        return (jnp.concatenate([even_part, odd_part], axis=1)
                .reshape(9 * 2 * cout, cin).astype(jnp.bfloat16))

    zero9 = jnp.zeros((9, cout, cin), jnp.float32)
    # Grid step k emits output planes 2k (even) and 2k+1 (odd) from padded planes
    # k, k+1, k+2 (nearest-x2 transposed-conv decomposition in depth):
    #   even: w[kd=0] * xpad[k]   + (w[kd=1]+w[kd=2]) * xpad[k+1]
    #   odd :                       (w[kd=0]+w[kd=1]) * xpad[k+1] + w[kd=2] * xpad[k+2]
    w0 = _stack(_taps(w_s[:, :, 0]), zero9)
    w1 = _stack(_taps(w_s[:, :, 1] + w_s[:, :, 2]),
                _taps(w_s[:, :, 0] + w_s[:, :, 1]))
    w2 = _stack(zero9, _taps(w_s[:, :, 2]))

    # Exact 0/1 upsample + spatial-tap gather matrices (grid-constant; bf16-exact).
    u = jnp.asarray(_build_upsample_tap_matrix(h_in, w_in), jnp.float32)
    u = u.reshape(9, hw_in, hw_out).astype(jnp.bfloat16)

    out = pl.pallas_call(
        up_conv_kernel,
        out_shape=jax.ShapeDtypeStruct((n, cout, d_out * hw_out), jnp.float32),
        grid_spec=pltpu.PrefetchScalarGridSpec(
            num_scalar_prefetch=0,
            grid=(n, d_in),
            in_specs=[
                # three-plane depth window of the padded input (only 3 planes in VMEM)
                pl.BlockSpec((1, 1, cin, hw_in), lambda b, k: (b, k, 0, 0)),
                pl.BlockSpec((1, 1, cin, hw_in), lambda b, k: (b, k + 1, 0, 0)),
                pl.BlockSpec((1, 1, cin, hw_in), lambda b, k: (b, k + 2, 0, 0)),
                # grid-constant blocks: DMA'd once, stay resident
                pl.BlockSpec((9 * 2 * cout, cin), lambda b, k: (0, 0)),
                pl.BlockSpec((9 * 2 * cout, cin), lambda b, k: (0, 0)),
                pl.BlockSpec((9 * 2 * cout, cin), lambda b, k: (0, 0)),
                pl.BlockSpec((9, hw_in, hw_out), lambda b, k: (0, 0, 0)),
                pl.BlockSpec((2 * cout, 1), lambda b, k: (0, 0)),
            ],
            out_specs=pl.BlockSpec((1, cout, 2 * hw_out), lambda b, k: (b, 0, k)),
        ),
        compiler_params=pltpu.CompilerParams(
            dimension_semantics=("parallel", "parallel"),
            vmem_limit_bytes=32 * 1024 * 1024),
    )(x_dp, x_dp, x_dp, w0, w1, w2, u, shift2)

    # Free trailing-dim split back to the PyTorch NCDHW output layout (no transpose).
    return out.reshape(n, cout, d_out, h_out, w_out)


def up_conv_reference(x, weight, bias, gamma, beta, mean, var, eps=1e-5, sf=2):
    """Pure-JAX reference: Upsample(x2 nearest) -> Conv3d(k=3,p=1) -> BN(eval) -> ReLU."""
    xu = jnp.repeat(jnp.repeat(jnp.repeat(x, sf, axis=2), sf, axis=3), sf, axis=4)
    xp = jnp.pad(xu, ((0, 0), (0, 0), (1, 1), (1, 1), (1, 1)))
    nb, cin, d, h, w = xu.shape
    cout = weight.shape[0]
    y = jnp.zeros((nb, cout, d, h, w), jnp.float32)
    for kd in range(3):
        for kh in range(3):
            for kw in range(3):
                patch = xp[:, :, kd:kd + d, kh:kh + h, kw:kw + w]
                y = y + jnp.einsum('ncdhw,oc->nodhw', patch, weight[:, :, kd, kh, kw])
    y = y + bias.reshape(1, -1, 1, 1, 1)
    y = (y - mean.reshape(1, -1, 1, 1, 1)) \
        * (gamma / jnp.sqrt(var + eps)).reshape(1, -1, 1, 1, 1) \
        + beta.reshape(1, -1, 1, 1, 1)
    return jnp.maximum(y, 0.0)


if __name__ == "__main__":
    key = jax.random.PRNGKey(0)
    k_x, k_w, k_b = jax.random.split(key, 3)

    # small shapes consistent with up_conv(ch_in=4, ch_out=8, scale_factor=2)
    n, cin, cout = 2, 4, 8
    d_in, h_in, w_in = 4, 8, 8
    x = jax.random.normal(k_x, (n, cin, d_in, h_in, w_in), dtype=jnp.float32)

    weight = 0.1 * jax.random.normal(k_w, (cout, cin, 3, 3, 3), dtype=jnp.float32)
    bias = 0.05 * jax.random.normal(k_b, (cout,), dtype=jnp.float32)
    gamma = jnp.ones((cout,), dtype=jnp.float32)           # BN weight
    beta = jnp.zeros((cout,), dtype=jnp.float32)           # BN bias
    running_mean = jnp.zeros((cout,), dtype=jnp.float32)
    running_var = jnp.ones((cout,), dtype=jnp.float32)

    out = up_conv_forward(x, weight, bias, gamma, beta, running_mean, running_var)
    out = jax.block_until_ready(out)
    assert out.shape == (n, cout, 2 * d_in, 2 * h_in, 2 * w_in), out.shape

    # Correctness check vs. a pure-JAX reference (inputs/weights rounded to bf16 to
    # mirror the kernel's bf16 matmul operands; accumulation and epilogue are f32).
    x_b = x.astype(jnp.bfloat16).astype(jnp.float32)
    w_b = weight.astype(jnp.bfloat16).astype(jnp.float32)
    ref = up_conv_reference(x_b, w_b, bias, gamma, beta, running_mean, running_var)
    max_err = float(jnp.max(jnp.abs(out - ref)))
    assert max_err < 5e-2, max_err

    print("KERNEL_OK")
</pallas_src>

<mosaic_0001>
module attributes {stable_mosaic.version = 11 : i64} {
  func.func @up_conv_kernel(%arg0: i32, %arg1: i32, %arg2: memref<1x1x4x64xbf16, #tpu.memory_space<vmem>>, %arg3: memref<1x1x4x64xbf16, #tpu.memory_space<vmem>>, %arg4: memref<1x1x4x64xbf16, #tpu.memory_space<vmem>>, %arg5: memref<144x4xbf16, #tpu.memory_space<vmem>>, %arg6: memref<144x4xbf16, #tpu.memory_space<vmem>>, %arg7: memref<144x4xbf16, #tpu.memory_space<vmem>>, %arg8: memref<9x64x256xbf16, #tpu.memory_space<vmem>>, %arg9: memref<16x1xf32, #tpu.memory_space<vmem>>, %arg10: memref<1x8x512xf32, #tpu.memory_space<vmem>>) attributes {dimension_semantics = [#tpu.dimension_semantics<parallel>, #tpu.dimension_semantics<parallel>], iteration_bounds = array<i64: 2, 4>, scalar_prefetch = 0 : i64, scratch_operands = 0 : i64, tpu.core_type = #tpu.core_type<tc>, window_params = [{transform_indices = @transform_0, window_bounds = array<i64: 1, 1, 4, 64>}, {transform_indices = @transform_1, window_bounds = array<i64: 1, 1, 4, 64>}, {transform_indices = @transform_2, window_bounds = array<i64: 1, 1, 4, 64>}, {pipeline_mode = #tpu.pipeline_mode<synchronous>, transform_indices = @transform_3, window_bounds = array<i64: 144, 4>}, {pipeline_mode = #tpu.pipeline_mode<synchronous>, transform_indices = @transform_4, window_bounds = array<i64: 144, 4>}, {pipeline_mode = #tpu.pipeline_mode<synchronous>, transform_indices = @transform_5, window_bounds = array<i64: 144, 4>}, {pipeline_mode = #tpu.pipeline_mode<synchronous>, transform_indices = @transform_6, window_bounds = array<i64: 9, 64, 256>}, {pipeline_mode = #tpu.pipeline_mode<synchronous>, transform_indices = @transform_7, window_bounds = array<i64: 16, 1>}, {transform_indices = @transform_8, window_bounds = array<i64: 1, 8, 512>}]} {
    %c0 = arith.constant 0 : index
    %c0_0 = arith.constant 0 : index
    %c0_1 = arith.constant 0 : index
    %c0_2 = arith.constant 0 : index
    %0 = vector.load %arg2[%c0, %c0_0, %c0_1, %c0_2] : memref<1x1x4x64xbf16, #tpu.memory_space<vmem>>, vector<1x1x4x64xbf16>
    %1 = vector.shape_cast %0 : vector<1x1x4x64xbf16> to vector<4x64xbf16>
    %c0_3 = arith.constant 0 : index
    %c0_4 = arith.constant 0 : index
    %c0_5 = arith.constant 0 : index
    %c0_6 = arith.constant 0 : index
    %2 = vector.load %arg3[%c0_3, %c0_4, %c0_5, %c0_6] : memref<1x1x4x64xbf16, #tpu.memory_space<vmem>>, vector<1x1x4x64xbf16>
    %3 = vector.shape_cast %2 : vector<1x1x4x64xbf16> to vector<4x64xbf16>
    %c0_7 = arith.constant 0 : index
    %c0_8 = arith.constant 0 : index
    %c0_9 = arith.constant 0 : index
    %c0_10 = arith.constant 0 : index
    %4 = vector.load %arg4[%c0_7, %c0_8, %c0_9, %c0_10] : memref<1x1x4x64xbf16, #tpu.memory_space<vmem>>, vector<1x1x4x64xbf16>
    %5 = vector.shape_cast %4 : vector<1x1x4x64xbf16> to vector<4x64xbf16>
    %c0_11 = arith.constant 0 : index
    %c0_12 = arith.constant 0 : index
    %6 = vector.load %arg5[%c0_11, %c0_12] : memref<144x4xbf16, #tpu.memory_space<vmem>>, vector<144x4xbf16>
    %cst = arith.constant dense<0.000000e+00> : vector<144x64xf32>
    %7 = tpu.matmul %6, %1, %cst {dimension_numbers = #tpu.dot_dimension_numbers<[1], [0], [0], [1], [0, 0, 1, 1], [], []>} : vector<144x4xbf16>, vector<4x64xbf16>, vector<144x64xf32> -> vector<144x64xf32>
    %c0_13 = arith.constant 0 : index
    %c0_14 = arith.constant 0 : index
    %8 = vector.load %arg6[%c0_13, %c0_14] : memref<144x4xbf16, #tpu.memory_space<vmem>>, vector<144x4xbf16>
    %cst_15 = arith.constant dense<0.000000e+00> : vector<144x64xf32>
    %9 = tpu.matmul %8, %3, %cst_15 {dimension_numbers = #tpu.dot_dimension_numbers<[1], [0], [0], [1], [0, 0, 1, 1], [], []>} : vector<144x4xbf16>, vector<4x64xbf16>, vector<144x64xf32> -> vector<144x64xf32>
    %10 = arith.addf %7, %9 : vector<144x64xf32>
    %c0_16 = arith.constant 0 : index
    %c0_17 = arith.constant 0 : index
    %11 = vector.load %arg7[%c0_16, %c0_17] : memref<144x4xbf16, #tpu.memory_space<vmem>>, vector<144x4xbf16>
    %cst_18 = arith.constant dense<0.000000e+00> : vector<144x64xf32>
    %12 = tpu.matmul %11, %5, %cst_18 {dimension_numbers = #tpu.dot_dimension_numbers<[1], [0], [0], [1], [0, 0, 1, 1], [], []>} : vector<144x4xbf16>, vector<4x64xbf16>, vector<144x64xf32> -> vector<144x64xf32>
    %13 = arith.addf %10, %12 : vector<144x64xf32>
    %14 = arith.truncf %13 : vector<144x64xf32> to vector<144x64xbf16>
    %cst_19 = arith.constant 0.000000e+00 : f32
    %15 = vector.broadcast %cst_19 : f32 to vector<16x256xf32>
    %16 = vector.extract_strided_slice %14 {offsets = [0, 0], sizes = [16, 64], strides = [1, 1]} : vector<144x64xbf16> to vector<16x64xbf16>
    %c0_20 = arith.constant 0 : index
    %c0_21 = arith.constant 0 : index
    %c0_22 = arith.constant 0 : index
    %17 = vector.load %arg8[%c0_20, %c0_21, %c0_22] : memref<9x64x256xbf16, #tpu.memory_space<vmem>>, vector<1x64x256xbf16>
    %18 = vector.shape_cast %17 : vector<1x64x256xbf16> to vector<64x256xbf16>
    %cst_23 = arith.constant dense<0.000000e+00> : vector<16x256xf32>
    %19 = tpu.matmul %16, %18, %cst_23 {dimension_numbers = #tpu.dot_dimension_numbers<[1], [0], [0], [1], [0, 0, 1, 1], [], []>} : vector<16x64xbf16>, vector<64x256xbf16>, vector<16x256xf32> -> vector<16x256xf32>
    %20 = arith.addf %15, %19 : vector<16x256xf32>
    %21 = vector.extract_strided_slice %14 {offsets = [16, 0], sizes = [16, 64], strides = [1, 1]} : vector<144x64xbf16> to vector<16x64xbf16>
    %c1 = arith.constant 1 : index
    %c0_24 = arith.constant 0 : index
    %c0_25 = arith.constant 0 : index
    %22 = vector.load %arg8[%c1, %c0_24, %c0_25] : memref<9x64x256xbf16, #tpu.memory_space<vmem>>, vector<1x64x256xbf16>
    %23 = vector.shape_cast %22 : vector<1x64x256xbf16> to vector<64x256xbf16>
    %cst_26 = arith.constant dense<0.000000e+00> : vector<16x256xf32>
    %24 = tpu.matmul %21, %23, %cst_26 {dimension_numbers = #tpu.dot_dimension_numbers<[1], [0], [0], [1], [0, 0, 1, 1], [], []>} : vector<16x64xbf16>, vector<64x256xbf16>, vector<16x256xf32> -> vector<16x256xf32>
    %25 = arith.addf %20, %24 : vector<16x256xf32>
    %26 = vector.extract_strided_slice %14 {offsets = [32, 0], sizes = [16, 64], strides = [1, 1]} : vector<144x64xbf16> to vector<16x64xbf16>
    %c2 = arith.constant 2 : index
    %c0_27 = arith.constant 0 : index
    %c0_28 = arith.constant 0 : index
    %27 = vector.load %arg8[%c2, %c0_27, %c0_28] : memref<9x64x256xbf16, #tpu.memory_space<vmem>>, vector<1x64x256xbf16>
    %28 = vector.shape_cast %27 : vector<1x64x256xbf16> to vector<64x256xbf16>
    %cst_29 = arith.constant dense<0.000000e+00> : vector<16x256xf32>
    %29 = tpu.matmul %26, %28, %cst_29 {dimension_numbers = #tpu.dot_dimension_numbers<[1], [0], [0], [1], [0, 0, 1, 1], [], []>} : vector<16x64xbf16>, vector<64x256xbf16>, vector<16x256xf32> -> vector<16x256xf32>
    %30 = arith.addf %25, %29 : vector<16x256xf32>
    %31 = vector.extract_strided_slice %14 {offsets = [48, 0], sizes = [16, 64], strides = [1, 1]} : vector<144x64xbf16> to vector<16x64xbf16>
    %c3 = arith.constant 3 : index
    %c0_30 = arith.constant 0 : index
    %c0_31 = arith.constant 0 : index
    %32 = vector.load %arg8[%c3, %c0_30, %c0_31] : memref<9x64x256xbf16, #tpu.memory_space<vmem>>, vector<1x64x256xbf16>
    %33 = vector.shape_cast %32 : vector<1x64x256xbf16> to vector<64x256xbf16>
    %cst_32 = arith.constant dense<0.000000e+00> : vector<16x256xf32>
    %34 = tpu.matmul %31, %33, %cst_32 {dimension_numbers = #tpu.dot_dimension_numbers<[1], [0], [0], [1], [0, 0, 1, 1], [], []>} : vector<16x64xbf16>, vector<64x256xbf16>, vector<16x256xf32> -> vector<16x256xf32>
    %35 = arith.addf %30, %34 : vector<16x256xf32>
    %36 = vector.extract_strided_slice %14 {offsets = [64, 0], sizes = [16, 64], strides = [1, 1]} : vector<144x64xbf16> to vector<16x64xbf16>
    %c4 = arith.constant 4 : index
    %c0_33 = arith.constant 0 : index
    %c0_34 = arith.constant 0 : index
    %37 = vector.load %arg8[%c4, %c0_33, %c0_34] : memref<9x64x256xbf16, #tpu.memory_space<vmem>>, vector<1x64x256xbf16>
    %38 = vector.shape_cast %37 : vector<1x64x256xbf16> to vector<64x256xbf16>
    %cst_35 = arith.constant dense<0.000000e+00> : vector<16x256xf32>
    %39 = tpu.matmul %36, %38, %cst_35 {dimension_numbers = #tpu.dot_dimension_numbers<[1], [0], [0], [1], [0, 0, 1, 1], [], []>} : vector<16x64xbf16>, vector<64x256xbf16>, vector<16x256xf32> -> vector<16x256xf32>
    %40 = arith.addf %35, %39 : vector<16x256xf32>
    %41 = vector.extract_strided_slice %14 {offsets = [80, 0], sizes = [16, 64], strides = [1, 1]} : vector<144x64xbf16> to vector<16x64xbf16>
    %c5 = arith.constant 5 : index
    %c0_36 = arith.constant 0 : index
    %c0_37 = arith.constant 0 : index
    %42 = vector.load %arg8[%c5, %c0_36, %c0_37] : memref<9x64x256xbf16, #tpu.memory_space<vmem>>, vector<1x64x256xbf16>
    %43 = vector.shape_cast %42 : vector<1x64x256xbf16> to vector<64x256xbf16>
    %cst_38 = arith.constant dense<0.000000e+00> : vector<16x256xf32>
    %44 = tpu.matmul %41, %43, %cst_38 {dimension_numbers = #tpu.dot_dimension_numbers<[1], [0], [0], [1], [0, 0, 1, 1], [], []>} : vector<16x64xbf16>, vector<64x256xbf16>, vector<16x256xf32> -> vector<16x256xf32>
    %45 = arith.addf %40, %44 : vector<16x256xf32>
    %46 = vector.extract_strided_slice %14 {offsets = [96, 0], sizes = [16, 64], strides = [1, 1]} : vector<144x64xbf16> to vector<16x64xbf16>
    %c6 = arith.constant 6 : index
    %c0_39 = arith.constant 0 : index
    %c0_40 = arith.constant 0 : index
    %47 = vector.load %arg8[%c6, %c0_39, %c0_40] : memref<9x64x256xbf16, #tpu.memory_space<vmem>>, vector<1x64x256xbf16>
    %48 = vector.shape_cast %47 : vector<1x64x256xbf16> to vector<64x256xbf16>
    %cst_41 = arith.constant dense<0.000000e+00> : vector<16x256xf32>
    %49 = tpu.matmul %46, %48, %cst_41 {dimension_numbers = #tpu.dot_dimension_numbers<[1], [0], [0], [1], [0, 0, 1, 1], [], []>} : vector<16x64xbf16>, vector<64x256xbf16>, vector<16x256xf32> -> vector<16x256xf32>
    %50 = arith.addf %45, %49 : vector<16x256xf32>
    %51 = vector.extract_strided_slice %14 {offsets = [112, 0], sizes = [16, 64], strides = [1, 1]} : vector<144x64xbf16> to vector<16x64xbf16>
    %c7 = arith.constant 7 : index
    %c0_42 = arith.constant 0 : index
    %c0_43 = arith.constant 0 : index
    %52 = vector.load %arg8[%c7, %c0_42, %c0_43] : memref<9x64x256xbf16, #tpu.memory_space<vmem>>, vector<1x64x256xbf16>
    %53 = vector.shape_cast %52 : vector<1x64x256xbf16> to vector<64x256xbf16>
    %cst_44 = arith.constant dense<0.000000e+00> : vector<16x256xf32>
    %54 = tpu.matmul %51, %53, %cst_44 {dimension_numbers = #tpu.dot_dimension_numbers<[1], [0], [0], [1], [0, 0, 1, 1], [], []>} : vector<16x64xbf16>, vector<64x256xbf16>, vector<16x256xf32> -> vector<16x256xf32>
    %55 = arith.addf %50, %54 : vector<16x256xf32>
    %56 = vector.extract_strided_slice %14 {offsets = [128, 0], sizes = [16, 64], strides = [1, 1]} : vector<144x64xbf16> to vector<16x64xbf16>
    %c8 = arith.constant 8 : index
    %c0_45 = arith.constant 0 : index
    %c0_46 = arith.constant 0 : index
    %57 = vector.load %arg8[%c8, %c0_45, %c0_46] : memref<9x64x256xbf16, #tpu.memory_space<vmem>>, vector<1x64x256xbf16>
    %58 = vector.shape_cast %57 : vector<1x64x256xbf16> to vector<64x256xbf16>
    %cst_47 = arith.constant dense<0.000000e+00> : vector<16x256xf32>
    %59 = tpu.matmul %56, %58, %cst_47 {dimension_numbers = #tpu.dot_dimension_numbers<[1], [0], [0], [1], [0, 0, 1, 1], [], []>} : vector<16x64xbf16>, vector<64x256xbf16>, vector<16x256xf32> -> vector<16x256xf32>
    %60 = arith.addf %55, %59 : vector<16x256xf32>
    %c0_48 = arith.constant 0 : index
    %c0_49 = arith.constant 0 : index
    %61 = vector.load %arg9[%c0_48, %c0_49] : memref<16x1xf32, #tpu.memory_space<vmem>>, vector<16x1xf32>
    %62 = vector.broadcast %61 : vector<16x1xf32> to vector<16x256xf32>
    %63 = arith.addf %60, %62 : vector<16x256xf32>
    %cst_50 = arith.constant 0.000000e+00 : f32
    %64 = vector.broadcast %cst_50 : f32 to vector<16x256xf32>
    %65 = arith.maximumf %63, %64 : vector<16x256xf32>
    %66 = vector.extract_strided_slice %65 {offsets = [0, 0], sizes = [8, 256], strides = [1, 1]} : vector<16x256xf32> to vector<8x256xf32>
    %c0_51 = arith.constant 0 : index
    %c0_52 = arith.constant 0 : index
    %c0_53 = arith.constant 0 : index
    %67 = vector.load %arg10[%c0_51, %c0_52, %c0_53] : memref<1x8x512xf32, #tpu.memory_space<vmem>>, vector<1x8x256xf32>
    %68 = vector.shape_cast %67 : vector<1x8x256xf32> to vector<8x256xf32>
    %69 = vector.shape_cast %66 : vector<8x256xf32> to vector<1x8x256xf32>
    tpu.vector_store %arg10[%c0_51, %c0_52, %c0_53], %69 {strides = array<i32>} : memref<1x8x512xf32, #tpu.memory_space<vmem>>, vector<1x8x256xf32>,
    %70 = vector.extract_strided_slice %65 {offsets = [8, 0], sizes = [8, 256], strides = [1, 1]} : vector<16x256xf32> to vector<8x256xf32>
    %c0_54 = arith.constant 0 : index
    %c0_55 = arith.constant 0 : index
    %c256 = arith.constant 256 : index
    %71 = vector.load %arg10[%c0_54, %c0_55, %c256] : memref<1x8x512xf32, #tpu.memory_space<vmem>>, vector<1x8x256xf32>
    %72 = vector.shape_cast %71 : vector<1x8x256xf32> to vector<8x256xf32>
    %73 = vector.shape_cast %70 : vector<8x256xf32> to vector<1x8x256xf32>
    tpu.vector_store %arg10[%c0_54, %c0_55, %c256], %73 {strides = array<i32>} : memref<1x8x512xf32, #tpu.memory_space<vmem>>, vector<1x8x256xf32>,
    return
  }
  func.func @transform_0(%arg0: i32, %arg1: i32) -> (i32, i32, i32, i32) {
    %c0_i32 = arith.constant 0 : i32
    %c0_i32_0 = arith.constant 0 : i32
    %c0_i32_1 = arith.constant 0 : i32
    return %arg0, %arg1, %c0_i32, %c0_i32_0 : i32, i32, i32, i32
  }
  func.func @transform_1(%arg0: i32, %arg1: i32) -> (i32, i32, i32, i32) {
    %c1_i32 = arith.constant 1 : i32
    %0 = arith.addi %arg1, %c1_i32 : i32
    %c0_i32 = arith.constant 0 : i32
    %c0_i32_0 = arith.constant 0 : i32
    %c0_i32_1 = arith.constant 0 : i32
    return %arg0, %0, %c0_i32, %c0_i32_0 : i32, i32, i32, i32
  }
  func.func @transform_2(%arg0: i32, %arg1: i32) -> (i32, i32, i32, i32) {
    %c2_i32 = arith.constant 2 : i32
    %0 = arith.addi %arg1, %c2_i32 : i32
    %c0_i32 = arith.constant 0 : i32
    %c0_i32_0 = arith.constant 0 : i32
    %c0_i32_1 = arith.constant 0 : i32
    return %arg0, %0, %c0_i32, %c0_i32_0 : i32, i32, i32, i32
  }
  func.func @transform_3(%arg0: i32, %arg1: i32) -> (i32, i32) {
    %c0_i32 = arith.constant 0 : i32
    %c0_i32_0 = arith.constant 0 : i32
    %c0_i32_1 = arith.constant 0 : i32
    return %c0_i32, %c0_i32_0 : i32, i32
  }
  func.func @transform_4(%arg0: i32, %arg1: i32) -> (i32, i32) {
    %c0_i32 = arith.constant 0 : i32
    %c0_i32_0 = arith.constant 0 : i32
    %c0_i32_1 = arith.constant 0 : i32
    return %c0_i32, %c0_i32_0 : i32, i32
  }
  func.func @transform_5(%arg0: i32, %arg1: i32) -> (i32, i32) {
    %c0_i32 = arith.constant 0 : i32
    %c0_i32_0 = arith.constant 0 : i32
    %c0_i32_1 = arith.constant 0 : i32
    return %c0_i32, %c0_i32_0 : i32, i32
  }
  func.func @transform_6(%arg0: i32, %arg1: i32) -> (i32, i32, i32) {
    %c0_i32 = arith.constant 0 : i32
    %c0_i32_0 = arith.constant 0 : i32
    %c0_i32_1 = arith.constant 0 : i32
    %c0_i32_2 = arith.constant 0 : i32
    return %c0_i32, %c0_i32_0, %c0_i32_1 : i32, i32, i32
  }
  func.func @transform_7(%arg0: i32, %arg1: i32) -> (i32, i32) {
    %c0_i32 = arith.constant 0 : i32
    %c0_i32_0 = arith.constant 0 : i32
    %c0_i32_1 = arith.constant 0 : i32
    return %c0_i32, %c0_i32_0 : i32, i32
  }
  func.func @transform_8(%arg0: i32, %arg1: i32) -> (i32, i32, i32) {
    %c0_i32 = arith.constant 0 : i32
    %c0_i32_0 = arith.constant 0 : i32
    return %arg0, %c0_i32, %arg1 : i32, i32, i32
  }
}

</mosaic_0001>

<bundles_post_ra>
// kernel: tpu_custom_call.1
= control target key start
LH: loop header
LB: loop body
LE: loop exit
PB: predicated region body
PF: predicated region fallthrough
CT: control target
= control target key end

     0   :  { %s3361_s0 = inlined_call_operand.vmem [shape: bf16[2,6,4,64], index: 0, kind: input, shape index: {}]   ;;  %s3362_s1 = inlined_call_operand.vmem [shape: bf16[2,6,4,64], index: 1, kind: input, shape index: {}]   ;;  %s3363_s2 = inlined_call_operand.vmem [shape: bf16[2,6,4,64], index: 2, kind: input, shape index: {}]   ;;  %s3364_s3 = inlined_call_operand.vmem [shape: bf16[144,4], index: 3, kind: input, shape index: {}]   ;;  %s3365_s4 = inlined_call_operand.vmem [shape: bf16[144,4], index: 4, kind: input, shape index: {}]   ;;  %s3366_s5 = inlined_call_operand.vmem [shape: bf16[144,4], index: 5, kind: input, shape index: {}]   ;;  %s3367_s6 = inlined_call_operand.hbm [shape: bf16[9,64,256], index: 6, kind: input, shape index: {}]   ;;  %s3368_s7 = inlined_call_operand.vmem [shape: f32[16,1], index: 7, kind: input, shape index: {}]   ;;  %s3369_s8 = inlined_call_operand.hbm [shape: f32[2,8,2048], index: 8, kind: output, shape index: {}]  }
   0x1   :  { %3378 = sst [smem:[#allocation13_spill]] %s3367_s6 }
   0x2   :  { %13 = vsyncpa [#allocation3], 0 }
   0x3   :  { %14 = vsyncpa [#allocation4], 0 }
   0x4   :  { %16 = vsyncpa [#allocation4 + $0x1], 0  ;;  %s2895_s27 = smov 0   ;;  %s2897_s28 = smov 0  }
   0x5   :  { %s2899_s29 = smov 0   ;;  %s2901_s30 = smov 0  }
   0x6   :  { %s2903_s9 = smov 0   ;;  %s2905_s10 = smov 0  }
   0x7   :  { %s2907_s11 = smov 0   ;;  %s2909_s12 = smov 0  }
   0x8 LB: > { %3379 = sst [smem:[#allocation8_spill]] %s2833_s10  ;;  %s2099_s13 = sadd.s32 4294967295, %s2841_s12   ;;  %s2841_s12 = sphi %s2909_s12, %s22_s12   ;;  %s2837_s11 = sphi %s2907_s11, %s3398_s11   ;;  %s2833_s10 = sphi %s2905_s10, %s3397_s10   ;;  %s2829_s9 = sphi %s2903_s9, %s3396_s9   ;;  %s2825_s30 = sphi %s2901_s30, %s3395_s30   ;;  %s2821_s29 = sphi %s2899_s29, %s3401_s29   ;;  %s2817_s28 = sphi %s2897_s28, %s3400_s28   ;;  %s2813_s27 = sphi %s2895_s27, %s3399_s27  }
   0x9   : > { %3380 = sst [smem:[#allocation9_spill]] %s2837_s11  ;;  %s2100_s14 = sadd.s32 4294967294, %s2841_s12  }
   0xa   : > { %s31_s15 = sadd.s32 1, %s2833_s10  ;;  %s34_s16 = sadd.s32 1, %s2837_s11 }
   0xb   : > { %p32_p0 = scmp.ge.s32.totalorder %s31_s15, 4  ;;  %s236_s17 = sadd.s32 1, %s2821_s29 }
   0xc   : > { %p246_p1 = scmp.ne.s32.totalorder %s2821_s29, %s2817_s28  ;;  %p247_p2 = scmp.eq.s32.totalorder %s2099_s13, 7 }
   0xd   : > { %s3403_s15 = smov (%p32_p0, %s31_s15), 0  ;;  %s3405_s16 = smov (!%p32_p0, %s34_s16), %s2837_s11 }
   0xe   : > { %3381 = sst [smem:[#allocation10_spill]] %s3403_s15  ;;  %s232_s18 = ssub.s32 %s2833_s10, %s3403_s15 }
   0xf   : > { %p2947_p3 = por %p247_p2, %p246_p1  ;;  %p36_p4 = scmp.ge.s32.totalorder %s3405_s16, 2 }
  0x10   : > { %p252_p5 = scmp.ne.s32.totalorder %s2817_s28, %s2813_s27  ;;  %p253_p6 = scmp.eq.s32.totalorder %s2100_s14, 7 }
  0x11   : > { %s3382_s19 = scalar_select %p2947_p3, 1, 0 }
  0x12   : > { %p2101_p7 = scmp.ge.s32.totalorder %s2841_s12, 1  ;;  %s3407_s16 = smov (%p36_p4, %s3405_s16), 0 }
  0x13   : > { %3383 = sst [smem:[#allocation11_spill]] %s3407_s16  ;;  %p2956_p8 = por %p253_p6, %p252_p5 }
  0x14   : > { %p260_p9 = scmp.lt.s32.totalorder %s2841_s12, 9  ;;  %s231_s21 = ssub.s32 %s2837_s11, %s3407_s16 }
  0x15   : > { %s3384_s20 = scalar_select %p2956_p8, 1, 0 }
  0x16   : > { %s233_s22 = sor.u32 %s232_s18, %s231_s21  ;;  %p2963_p10 = pnand %p2101_p7, %p260_p9 }
  0x17   : > { %p234_p11 = scmp.eq.s32.totalorder %s233_s22, 0  ;;  %p2967_p12 = scmp.eq.s32.totalorder %s2099_s13, 0 }
  0x18   : > { %s3385_s23 = scalar_select %p2963_p10, 1, 0 }
  0x19   : > { %s3386_s24 = scalar_select %p2967_p12, 1, 0 }
  0x1a   : > { %p2498_p13 = pneg %p2963_p10  ;;  %s2843_s26 = smov [#allocation2]  }
  0x1b   : > { %s2974_s25 = scalar_select %p234_p11, %s2821_s29, %s236_s17  }
  0x1c   : > { %s281_s14 = sshll.u32 %s2843_s26, 4  ;;  %p2978_p0 = pnand %p2967_p12, %p2498_p13  ;;  %s282_s14 = int_to_ptr.vmem [resolvable:$true] %s281_s14 }
  0x1d   : > { %3387 = sst [smem:[#allocation12_spill]] %s2974_s25  ;;  %s3389_s6 = sld [smem:[#allocation13_spill]] }
  0x1e   : > { %p2717_p2 = pneg %p2978_p0 }
  0x23   : > { %s2715_s13 = scalar_lea.hbm %s3389_s6, 9216 }
  0x24   : > { %p2716_p1 = scmp.ne.s32.totalorder %s3389_s6, %s2715_s13  ;;  %p2722_p6 = scmp.lt.u32.totalorder %s2715_s13, %s3389_s6 }
  0x26   : > { %p2718_p4 = pnand %p2717_p2, %p2716_p1 }
  0x28   : > { %p2719_p5 = pneg %p2718_p4 }
  0x2a   : > { %p2724_p7 = pnand %p2722_p6, %p2719_p5 }
  0x2c   : > { %2727 = shalt.err (!%p2724_p7)
}
  0x2d   : > { %s2728_s11 = scalar_lea.vmem %s282_s14, 9216  ;;  %p2736_p8 = scmp.lt.s32.totalorder %s282_s14, %s282_s14 }
  0x2e   : > { %p2729_p9 = scmp.ne.s32.totalorder %s282_s14, %s2728_s11  ;;  %p2737_p3 = scmp.lt.s32.totalorder %s2728_s11, %s2728_s11 }
  0x30   : > { %p2731_p11 = pnand %p2729_p9, %p2717_p2  ;;  %p2738_p12 = por %p2737_p3, %p2736_p8 }
  0x32   : > { %p2732_p13 = pneg %p2731_p11 }
  0x34   : > { %p2739_p10 = pnand %p2738_p12, %p2732_p13 }
  0x36   : > { %2742 = shalt.err (!%p2739_p10)
}
  0x37   : > { %s2844_s15 = smov 128   ;;  %s2845_s16 = smov 8  }
  0x38   : > { %2501 = dma.hbm_to_vmem [thread:$0]  (!%p2978_p0), %s3389_s6, 9216, %s282_s14, [#allocation3], %s2844_s15, %s2844_s15, %s2845_s16  }
  0x39   : > { %p3390_p1 = scmp.ne.s32.totalorder %s3385_s23, 0 }
  0x3a   : > { %p3391_p4 = scmp.ne.s32.totalorder (!%p3390_p1), %s3386_s24, 0 }
  0x3b   : > { %337 = sbr.rel (%p3390_p1) target bundleno = 770 (0x302), region = 52 }
  0x42   : > { %2804 = dma.done.wait (%p3391_p4), [#allocation3], 9216  }
  0x43   : > { %2806 = vsyncadd (%p3391_p4), [#allocation3], 4294958080  ;;  %p392_p3 = scmp.lt.s32.totalorder %s2829_s9, 1  ;;  %s400_s11 = sadd.s32 1, %s2825_s30  ;;  %v2846_v0 = vmov 0.0   ;;  %vm2847_vm0 = vmmov 0  }
  0x44   : > { %2281 = vmatprep.subr.bf16.mxu0 %v2846_v0  ;;  %p403_p8 = scmp.lt.s32.totalorder %s400_s11, 5  ;;  %p394_p10 = scmp.lt.s32.totalorder %s2825_s30, 5  ;;  %2395 = vmatprep.subr.bf16.mxu1 %v2846_v0  ;;  %vm534_vm1 = vcmask 1041408   ;;  %v2580_v3 = vld [vmem:[%s3365_s4] sm:$0xff]   ;;  %vm506_vm2 = vcmask 31744   ;;  %v2581_v6 = vld [vmem:[%s3365_s4 + $0x8] sm:$0xff]  }
  0x45   : > { %s393_s23 = scalar_select %p392_p3, %s2829_s9, 1  ;;  %2283 = vmatprep.mubr.msk.bf16.mxu0 %vm2847_vm0, %v2846_v0  ;;  %2299 = vmatprep.mubr.msk.bf16.mxu1 %vm2847_vm0, %v2846_v0  ;;  %v2597_v7 = vld [vmem:[%s3365_s4 + $0x20] sm:$0xff]   ;;  %v2582_v8 = vld [vmem:[%s3365_s4 + $0x10] sm:$0xff]   ;;  %v2599_v9 = vld [vmem:[%s3365_s4 + $0x28] sm:$0xff]   ;;  %v2848_v43 = vmov 0   ;;  %vm1105_vm3 = vcmask 523264  }
  0x46   : > { %s3409_s11 = smov (!%p403_p8, %s400_s11), 5  ;;  %v2583_v10 = vld [vmem:[%s3365_s4 + $0x18] sm:$0xff]   ;;  %v2601_v12 = vld [vmem:[%s3365_s4 + $0x30] sm:$0xff]   ;;  %v2584_v13 = vld [vmem:[%s3364_s3] sm:$0xff]   ;;  %2579 = vset.pattern.permute.xlu0 %v2848_v43  ;;  %p3392_p2 = scmp.ne.s32.totalorder %s3382_s19, 0 }
  0x47   : > { %s3014_s24 = smul.u32 6, %s393_s23  ;;  %v2603_v15 = vld [vmem:[%s3365_s4 + $0x38] sm:$0xff]   ;;  %v2585_v16 = vld [vmem:[%s3364_s3 + $0x8] sm:$0xff]   ;;  %v2605_v19 = vld [vmem:[%s3365_s4 + $0x40] sm:$0xff]   ;;  %s2849_s23 = smov [#allocation5]  }
  0x48   : > { %s395_s14 = scalar_select %p394_p10, %s2825_s30, 5  ;;  %v2607_v17 = vld [vmem:[#allocation2 + $0x40] ss:$8 sps:$4 sm:$0xff]   ;;  %v2609_v18 = vld [vmem:[#allocation2 + $0x44] ss:$8 sps:$4 sm:$0xff]   ;;  %v2586_v22 = vld [vmem:[%s3364_s3 + $0x10] sm:$0xff]  }
  0x49   : > { %s406_s18 = sadd.s32 %s3014_s24, %s3409_s11  ;;  %v2610_v20 = vld [vmem:[#allocation2 + $0x50] ss:$8 sps:$4 sm:$0xff]   ;;  %v2612_v21 = vld [vmem:[#allocation2 + $0x54] ss:$8 sps:$4 sm:$0xff]   ;;  %v2615_v23 = vld [vmem:[#allocation2 + $0x64] ss:$8 sps:$4 sm:$0xff]  }
  0x4a   : > { %s2108_s13 = sshll.u32 %s406_s18, 1  ;;  %s397_s17 = sadd.s32 %s3014_s24, %s395_s14  ;;  %v2613_v24 = vld [vmem:[#allocation2 + $0x60] ss:$8 sps:$4 sm:$0xff]   ;;  %v2587_v25 = vld [vmem:[%s3364_s3 + $0x18] sm:$0xff]   ;;  %v2590_v28 = vld [vmem:[%s3364_s3 + $0x30] sm:$0xff]  }
  0x4b   : > { %s408_s16 = scalar_lea.vmem %s3362_s1, %s2108_s13  ;;  %s2107_s21 = sshll.u32 %s397_s17, 1  ;;  %v2588_v26 = vld [vmem:[%s3364_s3 + $0x20] sm:$0xff]   ;;  %v2589_v27 = vld [vmem:[%s3364_s3 + $0x28] sm:$0xff]   ;;  %v2591_v29 = vld [vmem:[%s3364_s3 + $0x38] sm:$0xff]  }
  0x4c   : > { %v423_v1 = vld [vmem:[%s408_s16] sm:$0x3]  ;;  %s399_s10 = scalar_lea.vmem %s3361_s0, %s2107_s21  ;;  %v2594_v32 = vld [vmem:[%s3366_s5 + $0x8] sm:$0xff]   ;;  %v2595_v33 = vld [vmem:[%s3366_s5 + $0x10] sm:$0xff]   ;;  %s2246_s11 = sshll.u32 %s2825_s30, 2 }
  0x4d   : > { %v536_v2 = vsel %vm534_vm1, %v423_v1, 0  ;;  %v422_v4 = vld [vmem:[%s399_s10] sm:$0x3]  ;;  %s410_s10 = sadd.s32 2, %s2825_s30  ;;  %v2596_v34 = vld [vmem:[%s3366_s5 + $0x18] sm:$0xff]   ;;  %v2600_v36 = vld [vmem:[%s3366_s5 + $0x28] sm:$0xff]  }
  0x4e   : > { %2282 = vmatpush3.bf16.msra.mxu0 %v536_v2  ;;  %2396 = vmatpush3.bf16.msra.mxu1 %v536_v2  ;;  %v716_v5 = vsel %vm534_vm1, %v422_v4, 0  ;;  %p413_p12 = scmp.lt.s32.totalorder %s410_s10, 5  ;;  %v2592_v30 = vld [vmem:[%s3364_s3 + $0x40] sm:$0xff]   ;;  %v2602_v37 = vld [vmem:[%s3366_s5 + $0x30] sm:$0xff]   ;;  %v2604_v38 = vld [vmem:[%s3366_s5 + $0x38] sm:$0xff]   ;;  %s2247_s14 = sshll.u32 %s2829_s9, 4 }
  0x4f   : > { %2319 = vmatprep.subr.bf16.mxu0 %v2846_v0  ;;  %1109 = vmatprep.subr.bf16.mxu1 %v2609_v18  ;;  %v2593_v31 = vld [vmem:[%s3366_s5] sm:$0xff]   ;;  %v2616_v40 = vld [vmem:[#allocation2 + $0x70] ss:$8 sps:$4 sm:$0xff]   ;;  %v2618_v41 = vld [vmem:[#allocation2 + $0x74] ss:$8 sps:$4 sm:$0xff]   ;;  %s1968_s13 = sadd.s32 %s2247_s14, %s2246_s11  ;;  %s2747_s6 = sshll.u32 %s2849_s23, 4  ;;  %s2748_s6 = int_to_ptr.vmem [resolvable:$false] %s2747_s6 }
  0x50   : > { %s3411_s10 = smov (!%p413_p12, %s410_s10), 5  ;;  %v2598_v35 = vld [vmem:[%s3366_s5 + $0x20] sm:$0xff]  }
  0x51   : > { %2284 = vmatmul.mubr.msk.bf16.vlgmr.msra.gmra.mrb[0].mxu0 %vm506_vm2, %v2580_v3  ;;  %2300 = vmatmul.mubr.msk.bf16.vlgmr.msra.gmra.mrb[0].mxu1 %vm506_vm2, %v2597_v7  ;;  %s416_s17 = sadd.s32 %s3014_s24, %s3411_s10  ;;  %v2606_v39 = vld [vmem:[%s3366_s5 + $0x40] sm:$0xff]   ;;  %s389_s10 = sand.u32 1, %s2817_s28  }
  0x52   : > { %2320 = vmatpush3.bf16.msra.mxu0 %v716_v5  ;;  %2287 = vmatprep.mubr.msk.bf16.mxu0 %vm2847_vm0, %v2846_v0  ;;  %s2109_s22 = sshll.u32 %s416_s17, 1  ;;  %v2621_v42 = vld [vmem:[#allocation2 + $0x4] ss:$8 sps:$4 sm:$0xff]   ;;  %s2106_s18 = sshll.u32 %s389_s10, 5 }
  0x53   : > { %2357 = vmatprep.subr.bf16.mxu0 %v2846_v0  ;;  %2303 = vmatprep.mubr.msk.bf16.mxu1 %vm2847_vm0, %v2846_v0  ;;  %s418_s25 = scalar_lea.vmem %s3363_s2, %s2109_s22  ;;  %s2248_s17 = sshll.u32 %s1968_s13, 7 }
  0x54   : > { %v424_v11 = vld [vmem:[%s418_s25] sm:$0x3]  ;;  %1110 = vmatpush1.bf16.msra.mxu1 %v2607_v17  ;;  %s391_s26 = scalar_lea.vmem [#allocation5], %s2106_s18  ;;  %s3308_s16 = scalar_lea.hbm %s3369_s8, %s2248_s17 }
  0x55   : > { %v914_v14 = vsel %vm534_vm1, %v424_v11, 0  ;;  %1111 = vmatprep.subr.bf16.mxu1 %v2612_v21  ;;  %v2624_v11 = vld [vmem:[#allocation2 + $0x14] ss:$8 sps:$4 sm:$0xff]   ;;  %s1972_s15 = sshll.u32 %s391_s26, 4  ;;  %s1956_s21 = scalar_lea.sflag [#allocation4], %s389_s10  ;;  %s3310_s15 = int_to_ptr.vmem [resolvable:$true] %s1972_s15 }
  0x56   : > { %s2743_s22 = scalar_lea.vmem %s3310_s15, 512  ;;  %s2749_s25 = scalar_lea.vmem %s2748_s6, 1024 }
  0x57   : > { %p2744_p0 = scmp.ne.s32.totalorder %s3310_s15, %s2743_s22  ;;  %p2750_p7 = scmp.lt.s32.totalorder %s3310_s15, %s2748_s6 }
  0x58   : > { %1112 = vmatpush1.bf16.msra.mxu1 %v2610_v20  ;;  %p2751_p9 = scmp.lt.s32.totalorder %s2749_s25, %s2743_s22 }
  0x59   : > { %2288 = vmatmul.mubr.msk.bf16.gmra.mrb[4].mxu0 %vm506_vm2, %v2581_v6  ;;  %2304 = vmatmul.mubr.msk.bf16.gmra.mrb[4].mxu1 %vm506_vm2, %v2599_v9  ;;  %p2745_p5 = pnand %p2744_p0, %p3392_p2 }
  0x5a   : > { %2291 = vmatprep.mubr.msk.bf16.mxu0 %vm2847_vm0, %v2846_v0  ;;  %2307 = vmatprep.mubr.msk.bf16.mxu1 %vm2847_vm0, %v2846_v0  ;;  %p2752_p11 = por %p2751_p9, %p2750_p7 }
  0x5b   : > { %1113 = vmatprep.subr.bf16.mxu1 %v2615_v23  ;;  %v2628_v23 = vld [vmem:[#allocation2 + $0x30] ss:$8 sps:$4 sm:$0xff]   ;;  %p2746_p6 = pneg %p2745_p5 }
  0x5c   : > { %1114 = vmatpush1.bf16.msra.mxu1 %v2613_v24  ;;  %v2633_v24 = vld [vmem:[#allocation2 + $0x84] ss:$8 sps:$4 sm:$0xff]  }
  0x5d   : > { %1115 = vmatprep.subr.bf16.mxu1 %v2618_v41  ;;  %v2642_v41 = vld [vmem:[#allocation2 + $0xb4] ss:$8 sps:$4 sm:$0xff]   ;;  %p2753_p13 = pnand %p2752_p11, %p2746_p6 }
  0x60   : > { %1116 = vmatpush1.bf16.msra.mxu1 %v2616_v40 }
  0x61   : > { %2292 = vmatmul.mubr.msk.bf16.gmra.mrb[8].mxu0 %vm506_vm2, %v2582_v8  ;;  %2308 = vmatmul.mubr.msk.bf16.gmra.mrb[8].mxu1 %vm506_vm2, %v2601_v12  ;;  %v2619_v8 = vld [vmem:[#allocation2] ss:$8 sps:$4 sm:$0xff]  }
  0x62   : > { %2295 = vmatprep.mubr.msk.bf16.mxu0 %vm2847_vm0, %v2846_v0  ;;  %2311 = vmatprep.mubr.msk.bf16.mxu1 %vm2847_vm0, %v2846_v0  ;;  %v1931_v12 = vld [vmem:[%s3368_s7] sm:$0xff] }
  0x63   : > { %1195 = vmatprep.subr.bf16.mxu1 %v2621_v42  ;;  %1935 = vperm.xlu0 %2579, %v1931_v12  }
  0x69   : > { %2296 = vmatmul.mubr.msk.bf16.gmra.mrb[12].mxu0 %vm506_vm2, %v2583_v10  ;;  %2312 = vmatmul.mubr.msk.bf16.gmra.mrb[12].mxu1 %vm506_vm2, %v2603_v15 }
  0x6a   : > { %2321 = vmatprep.mubr.msk.bf16.mxu0 %vm2847_vm0, %v2846_v0  ;;  %2315 = vmatprep.mubr.msk.bf16.mxu1 %vm2847_vm0, %v2846_v0 }
  0x71   : > { %2322 = vmatmul.mubr.msk.bf16.vlgmr.msra.gmra.mrb[0].mxu0 %vm506_vm2, %v2584_v13  ;;  %2316 = vmatmul.mubr.msk.bf16.gmra.mrb[16].mxu1 %vm506_vm2, %v2605_v19  ;;  %v2622_v13 = vld [vmem:[#allocation2 + $0x10] ss:$8 sps:$4 sm:$0xff]   ;;  %v2625_v19 = vld [vmem:[#allocation2 + $0x20] ss:$8 sps:$4 sm:$0xff]  }
  0x72   : > { %2358 = vmatpush3.bf16.msra.mxu0 %v914_v14  ;;  %2325 = vmatprep.mubr.msk.bf16.mxu0 %vm2847_vm0, %v2846_v0  ;;  %v2627_v14 = vld [vmem:[#allocation2 + $0x24] ss:$8 sps:$4 sm:$0xff]  }
  0x73   : > { %1141 = vmatprep.mubr.bf16.mxu1 %v2848_v43 }
  0x79   : > { %2326 = vmatmul.mubr.msk.bf16.gmra.mrb[4].mxu0 %vm506_vm2, %v2585_v16  ;;  %v1932_v16 = vld [vmem:[%s3368_s7 + $0x8] sm:$0xff] }
  0x7a   : > { %2329 = vmatprep.mubr.msk.bf16.mxu0 %vm2847_vm0, %v2846_v0  ;;  %1940 = vperm.xlu0 %2579, %v1932_v16  }
  0x81   : > { %2330 = vmatmul.mubr.msk.bf16.gmra.mrb[8].mxu0 %vm506_vm2, %v2586_v22  ;;  %v2630_v22 = vld [vmem:[#allocation2 + $0x34] ss:$8 sps:$4 sm:$0xff]  }
  0x82   : > { %2333 = vmatprep.mubr.msk.bf16.mxu0 %vm2847_vm0, %v2846_v0 }
  0x89   : > { %2334 = vmatmul.mubr.msk.bf16.gmra.mrb[12].mxu0 %vm506_vm2, %v2587_v25 }
  0x8a   : > { %2337 = vmatprep.mubr.msk.bf16.mxu0 %vm2847_vm0, %v2846_v0 }
  0x91   : > { %2338 = vmatmul.mubr.msk.bf16.gmra.mrb[16].mxu0 %vm506_vm2, %v2588_v26 }
  0x92   : > { %2341 = vmatprep.mubr.msk.bf16.mxu0 %vm2847_vm0, %v2846_v0 }
  0x99   : > { %2342 = vmatmul.mubr.msk.bf16.gmra.mrb[20].mxu0 %vm506_vm2, %v2589_v27 }
  0x9a   : > { %2345 = vmatprep.mubr.msk.bf16.mxu0 %vm2847_vm0, %v2846_v0 }
  0xa1   : > { %2346 = vmatmul.mubr.msk.bf16.gmra.mrb[24].mxu0 %vm506_vm2, %v2590_v28  ;;  %v2631_v28 = vld [vmem:[#allocation2 + $0x80] ss:$8 sps:$4 sm:$0xff]  }
  0xa2   : > { %2349 = vmatprep.mubr.msk.bf16.mxu0 %vm2847_vm0, %v2846_v0 }
  0xa9   : > { %2350 = vmatmul.mubr.msk.bf16.gmra.mrb[28].mxu0 %vm506_vm2, %v2591_v29 }
  0xaa   : > { %2353 = vmatprep.mubr.msk.bf16.mxu0 %vm2847_vm0, %v2846_v0 }
  0xb1   : > { %2354 = vmatmul.mubr.msk.bf16.gmra.mrb[32].mxu0 %vm506_vm2, %v2592_v30 }
  0xb2   : > { %2359 = vmatprep.mubr.msk.bf16.mxu0 %vm2847_vm0, %v2846_v0 }
  0xb9   : > { %2360 = vmatmul.mubr.msk.bf16.vlgmr.msra.gmra.mrb[0].mxu0 %vm506_vm2, %v2593_v31  ;;  %v2636_v31 = vld [vmem:[#allocation2 + $0x94] ss:$8 sps:$4 sm:$0xff]  }
  0xba   : > { %2363 = vmatprep.mubr.msk.bf16.mxu0 %vm2847_vm0, %v2846_v0 }
  0xc1   : > { %2364 = vmatmul.mubr.msk.bf16.gmra.mrb[4].mxu0 %vm506_vm2, %v2594_v32  ;;  %v2634_v32 = vld [vmem:[#allocation2 + $0x90] ss:$8 sps:$4 sm:$0xff]  }
  0xc2   : > { %2367 = vmatprep.mubr.msk.bf16.mxu0 %vm2847_vm0, %v2846_v0 }
  0xc9   : > { %2368 = vmatmul.mubr.msk.bf16.gmra.mrb[8].mxu0 %vm506_vm2, %v2595_v33  ;;  %v2639_v33 = vld [vmem:[#allocation2 + $0xa4] ss:$8 sps:$4 sm:$0xff]  }
  0xca   : > { %2371 = vmatprep.mubr.msk.bf16.mxu0 %vm2847_vm0, %v2846_v0 }
  0xd1   : > { %2372 = vmatmul.mubr.msk.bf16.gmra.mrb[12].mxu0 %vm506_vm2, %v2596_v34 }
  0xd2   : > { %2375 = vmatprep.mubr.msk.bf16.mxu0 %vm2847_vm0, %v2846_v0 }
  0xd9   : > { %2376 = vmatmul.mubr.msk.bf16.gmra.mrb[16].mxu0 %vm506_vm2, %v2598_v35 }
  0xda   : > { %2379 = vmatprep.mubr.msk.bf16.mxu0 %vm2847_vm0, %v2846_v0 }
  0xe1   : > { %2380 = vmatmul.mubr.msk.bf16.gmra.mrb[20].mxu0 %vm506_vm2, %v2600_v36 }
  0xe2   : > { %2383 = vmatprep.mubr.msk.bf16.mxu0 %vm2847_vm0, %v2846_v0 }
  0xe9   : > { %2384 = vmatmul.mubr.msk.bf16.gmra.mrb[24].mxu0 %vm506_vm2, %v2602_v37 }
  0xea   : > { %2387 = vmatprep.mubr.msk.bf16.mxu0 %vm2847_vm0, %v2846_v0 }
  0xf1   : > { %2388 = vmatmul.mubr.msk.bf16.gmra.mrb[28].mxu0 %vm506_vm2, %v2604_v38  ;;  %v2637_v38 = vld [vmem:[#allocation2 + $0xa0] ss:$8 sps:$4 sm:$0xff]  }
  0xf2   : > { %2391 = vmatprep.mubr.msk.bf16.mxu0 %vm2847_vm0, %v2846_v0 }
  0xf9   : > { %2392 = vmatmul.mubr.msk.bf16.gmra.mrb[32].mxu0 %vm506_vm2, %v2606_v39 }
 0x124   : > { %v3195_v44 = vpop.f32.mrb[0].mxu1 }
 0x125   : > { %v2301_v45 = vpop.f32.mrb[1].mxu1 }
 0x126   : > { %v3197_v46 = vpop.f32.mrb[2].mxu1  ;;  %v2640_v45 = vld [vmem:[#allocation2 + $0xb0] ss:$8 sps:$4 sm:$0xff]  }
 0x127   : > { %v2302_v47 = vpop.f32.mrb[3].mxu1 }
 0x128   : > { %v2645_v47 = vld [vmem:[#allocation2 + $0xc4] ss:$8 sps:$4 sm:$0xff]  }
 0x12c   : > { %v3199_v48 = vpop.f32.mrb[4].mxu1 }
 0x12d   : > { %v2305_v49 = vpop.f32.mrb[5].mxu1 }
 0x12e   : > { %v3201_v50 = vpop.f32.mrb[6].mxu1 }
 0x12f   : > { %v2306_v51 = vpop.f32.mrb[7].mxu1 }
 0x134   : > { %v3203_v52 = vpop.f32.mrb[8].mxu1 }
 0x135   : > { %v2309_v53 = vpop.f32.mrb[9].mxu1 }
 0x136   : > { %v3205_v54 = vpop.f32.mrb[10].mxu1 }
 0x137   : > { %v2310_v55 = vpop.f32.mrb[11].mxu1 }
 0x138   : > { %v2643_v55 = vld [vmem:[#allocation2 + $0xc0] ss:$8 sps:$4 sm:$0xff]  }
 0x13c   : > { %v3207_v56 = vpop.f32.mrb[12].mxu1 }
 0x13d   : > { %v2313_v57 = vpop.f32.mrb[13].mxu1 }
 0x13e   : > { %v3209_v58 = vpop.f32.mrb[14].mxu1 }
 0x13f   : > { %v2314_v59 = vpop.f32.mrb[15].mxu1 }
 0x140   : > { %v2648_v59 = vld [vmem:[#allocation2 + $0xd4] ss:$8 sps:$4 sm:$0xff]  }
 0x144   : > { %v3211_v60 = vpop.f32.mrb[16].mxu1 }
 0x145   : > { %v2317_v61 = vpop.f32.mrb[17].mxu1 }
 0x146   : > { %v3213_v62 = vpop.f32.mrb[18].mxu1 }
 0x147   : > { %v2318_v63 = vpop.f32.mrb[19].mxu1 }
 0x148   : > { %v2646_v63 = vld [vmem:[#allocation2 + $0xd0] ss:$8 sps:$4 sm:$0xff]  }
 0x18c   : > { %v950_v0 = vpop.f32.mrb[0].mxu0 }
 0x18d   : > { %v2361_v1 = vpop.f32.mrb[1].mxu0 }
 0x18e   : > { %v953_v2 = vpop.f32.mrb[2].mxu0 }
 0x18f   : > { %v1039_v3 = vpack.c.bf16 %v953_v2, %v950_v0  ;;  %v2362_v4 = vpop.f32.mrb[3].mxu0 }
 0x194   : > { %v958_v5 = vpop.f32.mrb[4].mxu0 }
 0x195   : > { %v2365_v6 = vpop.f32.mrb[5].mxu0 }
 0x196   : > { %v961_v7 = vpop.f32.mrb[6].mxu0  ;;  %v2654_v6 = vld [vmem:[#allocation2 + $0xf4] ss:$8 sps:$4 sm:$0xff]  }
 0x197   : > { %v1040_v9 = vpack.c.bf16 %v961_v7, %v958_v5  ;;  %v2366_v10 = vpop.f32.mrb[7].mxu0 }
 0x199   : > { %2172 = vmatmul.mubr.msk.bf16.vlgmr.msra.gmra.mrb[20].mxu1 %vm1105_vm3, %v1040_v9  ;;  %v2657_v9 = vld [vmem:[#allocation2 + $0x104] ss:$8 sps:$4 sm:$0xff]  }
 0x19a   : > { %1196 = vmatpush1.bf16.msra.mxu1 %v2619_v8  ;;  %1227 = vmatprep.mubr.bf16.mxu1 %v2848_v43  ;;  %v2652_v8 = vld [vmem:[#allocation2 + $0xf0] ss:$8 sps:$4 sm:$0xff]  }
 0x19b   : > { %1197 = vmatprep.subr.bf16.mxu1 %v2624_v11 }
 0x19c   : > { %v966_v15 = vpop.f32.mrb[8].mxu0 }
 0x19d   : > { %v2369_v17 = vpop.f32.mrb[9].mxu0 }
 0x19e   : > { %1198 = vmatpush1.bf16.msra.mxu1 %v2622_v13  ;;  %v969_v18 = vpop.f32.mrb[10].mxu0  ;;  %v2655_v13 = vld [vmem:[#allocation2 + $0x100] ss:$8 sps:$4 sm:$0xff]   ;;  %v2663_v17 = vld [vmem:[#allocation2 + $0x124] ss:$8 sps:$4 sm:$0xff]  }
 0x19f   : > { %v1041_v20 = vpack.c.bf16 %v969_v18, %v966_v15  ;;  %v2370_v21 = vpop.f32.mrb[11].mxu0  ;;  %1199 = vmatprep.subr.bf16.mxu1 %v2627_v14  ;;  %v2660_v15 = vld [vmem:[#allocation2 + $0x114] ss:$8 sps:$4 sm:$0xff]  }
 0x1a0   : > { %v2661_v21 = vld [vmem:[#allocation2 + $0x120] ss:$8 sps:$4 sm:$0xff]  }
 0x1a2   : > { %1200 = vmatpush1.bf16.msra.mxu1 %v2625_v19 }
 0x1a3   : > { %1201 = vmatprep.subr.bf16.mxu1 %v2630_v22 }
 0x1a4   : > { %v3223_v25 = vpop.f32.mrb[12].mxu0 }
 0x1a5   : > { %v2373_v26 = vpop.f32.mrb[13].mxu0 }
 0x1a6   : > { %1202 = vmatpush1.bf16.msra.mxu1 %v2628_v23  ;;  %v3225_v27 = vpop.f32.mrb[14].mxu0  ;;  %v2664_v26 = vld [vmem:[#allocation2 + $0x130] ss:$8 sps:$4 sm:$0xff]  }
 0x1a7   : > { %v1042_v29 = vpack.c.bf16 %v3225_v27, %v3223_v25  ;;  %v2374_v30 = vpop.f32.mrb[15].mxu0  ;;  %1290 = vmatprep.subr.bf16.mxu1 %v2633_v24  ;;  %v2666_v24 = vld [vmem:[#allocation2 + $0x134] ss:$8 sps:$4 sm:$0xff]   ;;  %v2669_v27 = vld [vmem:[#allocation2 + $0x144] ss:$8 sps:$4 sm:$0xff]  }
 0x1a8   : > { %v2673_v30 = vld [vmem:[#allocation2 + $0x160] ss:$8 sps:$4 sm:$0xff]  }
 0x1a9   : > { %2181 = vmatmul.mubr.msk.bf16.vlgmr.msra.gmra.mrb[20].mxu1 %vm1105_vm3, %v1039_v3  ;;  %v2649_v3 = vld [vmem:[#allocation2 + $0xe0] ss:$8 sps:$4 sm:$0xff]  }
 0x1aa   : > { %1291 = vmatpush1.bf16.msra.mxu1 %v2631_v28  ;;  %1322 = vmatprep.mubr.bf16.mxu1 %v2848_v43  ;;  %v2672_v28 = vld [vmem:[#allocation2 + $0x154] ss:$8 sps:$4 sm:$0xff]  }
 0x1ab   : > { %1292 = vmatprep.subr.bf16.mxu1 %v2636_v31  ;;  %v2678_v31 = vld [vmem:[#allocation2 + $0x174] ss:$8 sps:$4 sm:$0xff]  }
 0x1ac   : > { %v982_v34 = vpop.f32.mrb[16].mxu0 }
 0x1ad   : > { %v3232_v35 = vadd.f32 %v982_v34, %v3195_v44  ;;  %v2377_v36 = vpop.f32.mrb[17].mxu0  ;;  %v2679_v34 = vld [vmem:[#allocation2 + $0x180] ss:$8 sps:$4 sm:$0xff]  }
 0x1ae   : > { %1293 = vmatpush1.bf16.msra.mxu1 %v2634_v32  ;;  %v985_v37 = vpop.f32.mrb[18].mxu0  ;;  %v2676_v32 = vld [vmem:[#allocation2 + $0x170] ss:$8 sps:$4 sm:$0xff]  }
 0x1af   : > { %v3235_v39 = vadd.f32 %v985_v37, %v3197_v46  ;;  %v2378_v40 = vpop.f32.mrb[19].mxu0  ;;  %1294 = vmatprep.subr.bf16.mxu1 %v2639_v33  ;;  %v2681_v33 = vld [vmem:[#allocation2 + $0x184] ss:$8 sps:$4 sm:$0xff]   ;;  %v2682_v36 = vld [vmem:[#allocation2 + $0x190] ss:$8 sps:$4 sm:$0xff]  }
 0x1b0   : > { %v2687_v37 = vld [vmem:[#allocation2 + $0x1a4] ss:$8 sps:$4 sm:$0xff]   ;;  %v2688_v40 = vld [vmem:[#allocation2 + $0x1b0] ss:$8 sps:$4 sm:$0xff]  }
 0x1b1   : > { %v1043_v42 = vpack.c.bf16 %v3235_v39, %v3232_v35  ;;  %v2684_v35 = vld [vmem:[#allocation2 + $0x194] ss:$8 sps:$4 sm:$0xff]  }
 0x1b2   : > { %1295 = vmatpush1.bf16.msra.mxu1 %v2637_v38  ;;  %v2685_v38 = vld [vmem:[#allocation2 + $0x1a0] ss:$8 sps:$4 sm:$0xff]   ;;  %v2690_v39 = vld [vmem:[#allocation2 + $0x1b4] ss:$8 sps:$4 sm:$0xff]  }
 0x1b3   : > { %1296 = vmatprep.subr.bf16.mxu1 %v2642_v41  ;;  %v2693_v41 = vld [vmem:[#allocation2 + $0x1c4] ss:$8 sps:$4 sm:$0xff]  }
 0x1b4   : > { %v990_v49 = vpop.f32.mrb[20].mxu0 }
 0x1b5   : > { %v3240_v44 = vadd.f32 %v990_v49, %v3199_v48  ;;  %v2381_v51 = vpop.f32.mrb[21].mxu0  ;;  %v2651_v48 = vld [vmem:[#allocation2 + $0xe4] ss:$8 sps:$4 sm:$0xff]  }
 0x1b6   : > { %1297 = vmatpush1.bf16.msra.mxu1 %v2640_v45  ;;  %v993_v53 = vpop.f32.mrb[22].mxu0  ;;  %v2696_v45 = vld [vmem:[#allocation2 + $0x1d4] ss:$8 sps:$4 sm:$0xff]   ;;  %v2699_v49 = vld [vmem:[#allocation2 + $0x1e4] ss:$8 sps:$4 sm:$0xff]  }
 0x1b7   : > { %v3243_v46 = vadd.f32 %v993_v53, %v3201_v50  ;;  %v2382_v57 = vpop.f32.mrb[23].mxu0  ;;  %1389 = vmatprep.subr.bf16.mxu1 %v2645_v47  ;;  %v2694_v47 = vld [vmem:[#allocation2 + $0x1d0] ss:$8 sps:$4 sm:$0xff]   ;;  %v2702_v51 = vld [vmem:[#allocation2 + $0x1f4] ss:$8 sps:$4 sm:$0xff]  }
 0x1b8   : > { %v2700_v53 = vld [vmem:[#allocation2 + $0x1f0] ss:$8 sps:$4 sm:$0xff]   ;;  %v2708_v57 = vld [vmem:[#allocation2 + $0x214] ss:$8 sps:$4 sm:$0xff]  }
 0x1b9   : > { %v1044_v61 = vpack.c.bf16 %v3243_v46, %v3240_v44  ;;  %2190 = vmatmul.mubr.msk.bf16.vlgmr.msra.gmra.mrb[20].mxu1 %vm1105_vm3, %v1041_v20  ;;  %v2697_v44 = vld [vmem:[#allocation2 + $0x1e0] ss:$8 sps:$4 sm:$0xff]  }
 0x1ba   : > { %1390 = vmatpush1.bf16.msra.mxu1 %v2643_v55  ;;  %1421 = vmatprep.mubr.bf16.mxu1 %v2848_v43  ;;  %v2705_v55 = vld [vmem:[#allocation2 + $0x204] ss:$8 sps:$4 sm:$0xff]   ;;  %v2703_v46 = vld [vmem:[#allocation2 + $0x200] ss:$8 sps:$4 sm:$0xff]  }
 0x1bb   : > { %1391 = vmatprep.subr.bf16.mxu1 %v2648_v59  ;;  %v2706_v59 = vld [vmem:[#allocation2 + $0x210] ss:$8 sps:$4 sm:$0xff]  }
 0x1bc   : > { %v998_v0 = vpop.f32.mrb[24].mxu0 }
 0x1bd   : > { %v3250_v1 = vadd.f32 %v998_v0, %v3203_v52  ;;  %v2385_v50 = vpop.f32.mrb[25].mxu0  ;;  %v2712_v0 = vld [vmem:[#allocation2 + $0x230] ss:$8 sps:$4 sm:$0xff]  }
 0x1be   : > { %1392 = vmatpush1.bf16.msra.mxu1 %v2646_v63  ;;  %v1001_v2 = vpop.f32.mrb[26].mxu0  ;;  %v2709_v63 = vld [vmem:[#allocation2 + $0x220] ss:$8 sps:$4 sm:$0xff]  }
 0x1bf   : > { %v3253_v4 = vadd.f32 %v1001_v2, %v3205_v54  ;;  %v2386_v5 = vpop.f32.mrb[27].mxu0  ;;  %1393 = vmatprep.subr.bf16.mxu1 %v2651_v48  ;;  %v2714_v48 = vld [vmem:[#allocation2 + $0x234] ss:$8 sps:$4 sm:$0xff]  }
 0x1c1   : > { %v1045_v7 = vpack.c.bf16 %v3253_v4, %v3250_v1  ;;  %v1936_v1 = vpop.permute.xlu0 %1935 }
 0x1c2   : > { %1394 = vmatpush1.bf16.msra.mxu1 %v2649_v3 }
 0x1c3   : > { %1395 = vmatprep.subr.bf16.mxu1 %v2654_v6 }
 0x1c4   : > { %v1006_v10 = vpop.f32.mrb[28].mxu0 }
 0x1c5   : > { %v3258_v52 = vadd.f32 %v1006_v10, %v3207_v56  ;;  %v2389_v11 = vpop.f32.mrb[29].mxu0  ;;  %v2658_v56 = vld [vmem:[#allocation2 + $0x110] ss:$8 sps:$4 sm:$0xff]   ;;  %v1941_v3 = vpop.permute.xlu0 %1940 }
 0x1c6   : > { %1396 = vmatpush1.bf16.msra.mxu1 %v2652_v8  ;;  %v1009_v12 = vpop.f32.mrb[30].mxu0 }
 0x1c7   : > { %v3261_v54 = vadd.f32 %v1009_v12, %v3209_v58  ;;  %v2390_v14 = vpop.f32.mrb[31].mxu0  ;;  %1488 = vmatprep.subr.bf16.mxu1 %v2657_v9 }
 0x1c9   : > { %v1046_v16 = vpack.c.bf16 %v3261_v54, %v3258_v52  ;;  %2199 = vmatmul.mubr.msk.bf16.vlgmr.msra.gmra.mrb[20].mxu1 %vm1105_vm3, %v1042_v29  ;;  %v2675_v29 = vld [vmem:[#allocation2 + $0x164] ss:$8 sps:$4 sm:$0xff]  }
 0x1ca   : > { %1489 = vmatpush1.bf16.msra.mxu1 %v2655_v13  ;;  %1520 = vmatprep.mubr.bf16.mxu1 %v2848_v43 }
 0x1cb   : > { %1490 = vmatprep.subr.bf16.mxu1 %v2660_v15 }
 0x1cc   : > { %v1014_v18 = vpop.f32.mrb[32].mxu0 }
 0x1cd   : > { %v3271_v58 = vadd.f32 %v1014_v18, %v3211_v60  ;;  %v2393_v19 = vpop.f32.mrb[33].mxu0  ;;  %v2667_v60 = vld [vmem:[#allocation2 + $0x140] ss:$8 sps:$4 sm:$0xff]  }
 0x1ce   : > { %1491 = vmatpush1.bf16.msra.mxu1 %v2658_v56  ;;  %v1017_v20 = vpop.f32.mrb[34].mxu0 }
 0x1cf   : > { %v3274_v22 = vadd.f32 %v1017_v20, %v3213_v62  ;;  %v2394_v23 = vpop.f32.mrb[35].mxu0  ;;  %1492 = vmatprep.subr.bf16.mxu1 %v2663_v17  ;;  %v2670_v62 = vld [vmem:[#allocation2 + $0x150] ss:$8 sps:$4 sm:$0xff]  }
 0x1d1   : > { %v1047_v25 = vpack.c.bf16 %v3274_v22, %v3271_v58 }
 0x1d2   : > { %1493 = vmatpush1.bf16.msra.mxu1 %v2661_v21 }
 0x1d3   : > { %1494 = vmatprep.subr.bf16.mxu1 %v2666_v24 }
 0x1d6   : > { %1495 = vmatpush1.bf16.msra.mxu1 %v2664_v26 }
 0x1d7   : > { %1587 = vmatprep.subr.bf16.mxu1 %v2669_v27 }
 0x1d9   : > { %2208 = vmatmul.mubr.msk.bf16.vlgmr.msra.gmra.mrb[20].mxu1 %vm1105_vm3, %v1043_v42  ;;  %v2691_v42 = vld [vmem:[#allocation2 + $0x1c0] ss:$8 sps:$4 sm:$0xff]  }
 0x1da   : > { %1588 = vmatpush1.bf16.msra.mxu1 %v2667_v60  ;;  %1619 = vmatprep.mubr.bf16.mxu1 %v2848_v43 }
 0x1db   : > { %1589 = vmatprep.subr.bf16.mxu1 %v2672_v28 }
 0x1de   : > { %1590 = vmatpush1.bf16.msra.mxu1 %v2670_v62 }
 0x1df   : > { %1591 = vmatprep.subr.bf16.mxu1 %v2675_v29 }
 0x1e2   : > { %1592 = vmatpush1.bf16.msra.mxu1 %v2673_v30 }
 0x1e3   : > { %1593 = vmatprep.subr.bf16.mxu1 %v2678_v31 }
 0x1e6   : > { %1594 = vmatpush1.bf16.msra.mxu1 %v2676_v32 }
 0x1e7   : > { %1686 = vmatprep.subr.bf16.mxu1 %v2681_v33 }
 0x1e9   : > { %2217 = vmatmul.mubr.msk.bf16.vlgmr.msra.gmra.mrb[20].mxu1 %vm1105_vm3, %v1044_v61  ;;  %v2711_v61 = vld [vmem:[#allocation2 + $0x224] ss:$8 sps:$4 sm:$0xff]  }
 0x1ea   : > { %1687 = vmatpush1.bf16.msra.mxu1 %v2679_v34  ;;  %1718 = vmatprep.mubr.bf16.mxu1 %v2848_v43 }
 0x1eb   : > { %1688 = vmatprep.subr.bf16.mxu1 %v2684_v35 }
 0x1ee   : > { %1689 = vmatpush1.bf16.msra.mxu1 %v2682_v36 }
 0x1ef   : > { %1690 = vmatprep.subr.bf16.mxu1 %v2687_v37 }
 0x1f2   : > { %1691 = vmatpush1.bf16.msra.mxu1 %v2685_v38 }
 0x1f3   : > { %1692 = vmatprep.subr.bf16.mxu1 %v2690_v39 }
 0x1f6   : > { %1693 = vmatpush1.bf16.msra.mxu1 %v2688_v40 }
 0x1f7   : > { %1785 = vmatprep.subr.bf16.mxu1 %v2693_v41 }
 0x1f9   : > { %2226 = vmatmul.mubr.msk.bf16.vlgmr.msra.gmra.mrb[20].mxu1 %vm1105_vm3, %v1045_v7 }
 0x1fa   : > { %1786 = vmatpush1.bf16.msra.mxu1 %v2691_v42  ;;  %1817 = vmatprep.mubr.bf16.mxu1 %v2848_v43 }
 0x1fb   : > { %1787 = vmatprep.subr.bf16.mxu1 %v2696_v45 }
 0x1fe   : > { %1788 = vmatpush1.bf16.msra.mxu1 %v2694_v47 }
 0x1ff   : > { %1789 = vmatprep.subr.bf16.mxu1 %v2699_v49 }
 0x202   : > { %1790 = vmatpush1.bf16.msra.mxu1 %v2697_v44 }
 0x203   : > { %1791 = vmatprep.subr.bf16.mxu1 %v2702_v51 }
 0x206   : > { %1792 = vmatpush1.bf16.msra.mxu1 %v2700_v53 }
 0x207   : > { %1884 = vmatprep.subr.bf16.mxu1 %v2705_v55 }
 0x209   : > { %2235 = vmatmul.mubr.msk.bf16.vlgmr.msra.gmra.mrb[20].mxu1 %vm1105_vm3, %v1046_v16 }
 0x20a   : > { %1885 = vmatpush1.bf16.msra.mxu1 %v2703_v46  ;;  %1916 = vmatprep.mubr.bf16.mxu1 %v2848_v43 }
 0x20b   : > { %1886 = vmatprep.subr.bf16.mxu1 %v2708_v57 }
 0x20e   : > { %1887 = vmatpush1.bf16.msra.mxu1 %v2706_v59 }
 0x20f   : > { %1888 = vmatprep.subr.bf16.mxu1 %v2711_v61 }
 0x212   : > { %1889 = vmatpush1.bf16.msra.mxu1 %v2709_v63 }
 0x213   : > { %1890 = vmatprep.subr.bf16.mxu1 %v2714_v48 }
 0x216   : > { %1891 = vmatpush1.bf16.msra.mxu1 %v2712_v0 }
 0x219   : > { %2244 = vmatmul.mubr.msk.bf16.vlgmr.msra.gmra.mrb[20].mxu1 %vm1105_vm3, %v1047_v25 }
 0x2ec   : > { %v1918_v43 = vpop.f32.mrb[20].mxu1 }
 0x2ed   : > { %v1943_v50 = vadd.f32 %v1936_v1, %v1918_v43  ;;  %v1920_v2 = vpop.f32.mrb[21].mxu1 }
 0x2ee   : > { %v1944_v4 = vadd.f32 %v1936_v1, %v1920_v2  ;;  %v1922_v5 = vpop.f32.mrb[22].mxu1 }
 0x2ef   : > { %v1947_v6 = vmax.f32 %v1943_v50, 0.0  ;;  %v1945_v7 = vadd.f32 %v1941_v3, %v1922_v5  ;;  %v1924_v8 = vpop.f32.mrb[23].mxu1 }
 0x2f0   : > { %v1948_v9 = vmax.f32 %v1944_v4, 0.0  ;;  %v1946_v10 = vadd.f32 %v1941_v3, %v1924_v8 }
 0x2f1   : > { %1951 = vst [vmem:[%s391_s26] sm:$0xff] %v1947_v6  ;;  %v1949_v52 = vmax.f32 %v1945_v7, 0.0 }
 0x2f2   : > { %1952 = vst [vmem:[%s391_s26 + $0x8] sm:$0xff] %v1948_v9  ;;  %v1950_v11 = vmax.f32 %v1946_v10, 0.0 }
 0x2f3   : > { %1953 = vst [vmem:[%s391_s26 + $0x10] sm:$0xff] %v1949_v52 }
 0x2f4   : > { %1954 = vst [vmem:[%s391_s26 + $0x18] sm:$0xff] %v1950_v11 }
 0x2f5   : > { %2756 = shalt.err (!%p2753_p13)
}
 0x2f6   : > { %s2757_s24 = scalar_lea.hbm %s3308_s16, 512  ;;  %s2761_s14 = scalar_lea.hbm %s3369_s8, 4096 }
 0x2f7   : > { %p2758_p1 = scmp.ne.s32.totalorder %s3308_s16, %s2757_s24  ;;  %p2762_p8 = scmp.lt.u32.totalorder %s3308_s16, %s3369_s8 }
 0x2f8   : > { %p2763_p10 = scmp.lt.u32.totalorder %s2761_s14, %s2757_s24  ;;  %p2765_p0 = scmp.lt.u32.totalorder %s2757_s24, %s3308_s16 }
 0x2f9   : > { %p2759_p4 = pnand %p2758_p1, %p3392_p2 }
 0x2fa   : > { %p2764_p12 = por %p2763_p10, %p2762_p8 }
 0x2fb   : > { %p2760_p3 = pneg %p2759_p4 }
 0x2fc   : > { %p2766_p5 = por %p2765_p0, %p2764_p12 }
 0x2fe   : > { %p2767_p6 = pnand %p2766_p5, %p2760_p3 }
 0x300   : > { %2770 = shalt.err (!%p2767_p6)
}
 0x301   : > { %2496 = dma.vmem_to_hbm [thread:$0]  (%p3392_p2), %s3310_s15, 512, %s3308_s16, %s1956_s21  }
 0x302 PF: > { %p2508_p7 = scmp.ge.s32.totalorder %s2841_s12, 2  ;;  %s1984_s17 = sand.u32 1, %s2813_s27  }
 0x303   : > { %p3393_p9 = scmp.ne.s32.totalorder %s3384_s20, 0  ;;  %s1985_s26 = scalar_lea.sflag [#allocation4], %s1984_s17 }
 0x305   : > { %p2503_p11 = pnand %p2508_p7, %p3393_p9 }
 0x307   : > { %2808 = dma.done.wait (!%p2503_p11), %s1985_s26, 512  }
 0x308   : > { %2810 = vsyncadd (!%p2503_p11), %s1985_s26, 4294966784  ;;  %s22_s12 = sadd.s32 1, %s2841_s12   ;;  %s3394_s19 = sld [smem:[#allocation12_spill]] }
 0x309   : > { %p19_p13 = scmp.ge.s32.totalorder %s22_s12, 10   ;;  %s3395_s30 = sld [smem:[#allocation8_spill]] }
 0x30a   : > { %s3396_s9 = sld [smem:[#allocation9_spill]]  ;;  %s3397_s10 = sld [smem:[#allocation10_spill]] }
 0x30b   : > { %s3398_s11 = sld [smem:[#allocation11_spill]]  ;;  %s3399_s27 = smov %s2817_s28 }
 0x30c   : > { %s3400_s28 = smov %s2821_s29  ;;  %21 = sbr.rel (!%p19_p13) target bundleno = 8 (0x8), region = 106 }
 0x30e   : > { %s3401_s29 = smov %s3394_s19 }
 0x313   :  { %1990 = vsyncpa [#allocation3], 1 }
 0x314   :  { %1992 = vsyncpa [#allocation3 + $0x1], 1 }
 0x315   :  { %1993 = vsyncpa [#allocation4], 1 }
 0x316   :  { %1995 = vsyncpa [#allocation4 + $0x1], 1 }

</bundles_post_ra>
